<compile_context>
chip_gen: v6e
topology: v6e:2x2x1
jax: 0.10.0
libtpu: 0.0.40
codegen_flags: <defaults>
</compile_context>

<pallas_src>
import functools
import math

import jax
import jax.numpy as jnp
from jax.experimental import pallas as pl
from jax.experimental.pallas import tpu as pltpu


def _l1_partial_kernel(rows, block_rows, o_ref, t_ref, m_ref, out_ref):
    """One grid step: reduce a (block_rows, lane) tile to its two partial sums."""
    o = o_ref[...].astype(jnp.float32)
    t = t_ref[...].astype(jnp.float32)
    m = m_ref[...].astype(jnp.float32)

    term = m * jnp.abs(o - t)  # == |o*m - t*m| for a non-negative mask

    if rows % block_rows != 0:
        # The last block overhangs the array; its out-of-range rows contain
        # unspecified data, so mask them out explicitly.
        i = pl.program_id(0)
        row_ids = i * block_rows + jax.lax.broadcasted_iota(jnp.int32, o.shape, 0)
        valid = row_ids < rows
        term = jnp.where(valid, term, 0.0)
        m = jnp.where(valid, m, 0.0)

    out_ref[0, 0] = jnp.sum(term)  # partial sum of |o - t| * m
    out_ref[0, 1] = jnp.sum(m)     # partial sum of mask


@jax.jit
def l1_loss(output, target, mask):
    assert output.shape == target.shape == mask.shape
    total = math.prod(output.shape)

    # Lane-dense flattening: pick the widest lane axis that divides the total
    # element count (no data movement: reshape of a contiguous array is free).
    lane = None
    for cand in (1024, 512, 256, 128):
        if total % cand == 0:
            lane = cand
            break

    if lane is None:
        # Rare fallback (total not divisible by 128): pad only the flattened
        # 1-D view by < 128 elements.  Zero padding is neutral for both sums.
        lane = 128
        pad = (-total) % lane
        o2 = jnp.pad(output.reshape(-1), (0, pad)).reshape(-1, lane)
        t2 = jnp.pad(target.reshape(-1), (0, pad)).reshape(-1, lane)
        m2 = jnp.pad(mask.reshape(-1), (0, pad)).reshape(-1, lane)
    else:
        o2 = output.reshape(-1, lane)
        t2 = target.reshape(-1, lane)
        m2 = mask.reshape(-1, lane)

    rows = o2.shape[0]

    # ~2 MiB f32 per input block: 3 inputs x 2 pipeline buffers ~= 12 MiB VMEM,
    # inside the default scoped-VMEM budget on v5e (16 MiB) and v6e/v7x (32 MiB).
    target_block_elems = 512 * 1024
    block_rows = max(8, target_block_elems // lane)  # multiple of 8 by construction
    if block_rows >= rows:
        block_rows = rows  # single block; full-extent block shape is always legal
    grid = (pl.cdiv(rows, block_rows),)

    in_spec = pl.BlockSpec((block_rows, lane), lambda i: (i, 0))

    partials = pl.pallas_call(
        functools.partial(_l1_partial_kernel, rows, block_rows),
        out_shape=jax.ShapeDtypeStruct((grid[0], 2), jnp.float32),
        grid_spec=pltpu.PrefetchScalarGridSpec(
            num_scalar_prefetch=0,
            grid=grid,
            in_specs=[in_spec, in_spec, in_spec],
            out_specs=pl.BlockSpec(
                (1, 2), lambda i: (i, 0), memory_space=pltpu.SMEM
            ),
        ),
        compiler_params=pltpu.CompilerParams(
            # Independent per-block partials -> parallel grid axis; on v7x this
            # lets both TensorCores share the reduction (no effect on v5e/v6e).
            dimension_semantics=("parallel",),
        ),
    )(o2, t2, m2)

    # Tiny final reduction + divide in plain JAX.  Matches the reference math
    # exactly (an all-zero mask yields NaN/Inf, same as the PyTorch module).
    return jnp.sum(partials[:, 0]) / jnp.sum(partials[:, 1])


if __name__ == "__main__":
    key = jax.random.PRNGKey(0)
    k_out, k_tgt, k_mask = jax.random.split(key, 3)

    B, C, H, W = 2, 4, 16, 16  # NCHW, matching the PyTorch conv convention
    output = jax.random.normal(k_out, (B, C, H, W), dtype=jnp.float32)
    target = jax.random.normal(k_tgt, (B, C, H, W), dtype=jnp.float32)
    mask = (jax.random.uniform(k_mask, (B, C, H, W)) > 0.5).astype(jnp.float32)

    loss = l1_loss(output, target, mask)
    jax.block_until_ready(loss)

    # Reference check in plain JAX (same math as F.l1_loss(..., 'sum') / mask.sum()).
    ref = jnp.sum(jnp.abs(output * mask - target * mask)) / jnp.sum(mask)
    assert jnp.allclose(loss, ref, rtol=1e-5, atol=1e-5), (loss, ref)

    print("KERNEL_OK")
</pallas_src>

<mosaic_0001>
module attributes {stable_mosaic.version = 11 : i64} {
  func.func @_l1_partial_kernel(%arg0: i32, %arg1: memref<2x1024xf32, #tpu.memory_space<vmem>>, %arg2: memref<2x1024xf32, #tpu.memory_space<vmem>>, %arg3: memref<2x1024xf32, #tpu.memory_space<vmem>>, %arg4: memref<1x2xf32, #tpu.memory_space<smem>>) attributes {dimension_semantics = [#tpu.dimension_semantics<parallel>], iteration_bounds = array<i64: 1>, scalar_prefetch = 0 : i64, scratch_operands = 0 : i64, tpu.core_type = #tpu.core_type<tc>, window_params = [{transform_indices = @transform_0, window_bounds = array<i64: 2, 1024>}, {transform_indices = @transform_1, window_bounds = array<i64: 2, 1024>}, {transform_indices = @transform_2, window_bounds = array<i64: 2, 1024>}, {transform_indices = @transform_3, window_bounds = array<i64: 1, 2>}]} {
    %c0 = arith.constant 0 : index
    %c0_0 = arith.constant 0 : index
    %0 = vector.load %arg1[%c0, %c0_0] : memref<2x1024xf32, #tpu.memory_space<vmem>>, vector<2x1024xf32>
    %c0_1 = arith.constant 0 : index
    %c0_2 = arith.constant 0 : index
    %1 = vector.load %arg2[%c0_1, %c0_2] : memref<2x1024xf32, #tpu.memory_space<vmem>>, vector<2x1024xf32>
    %c0_3 = arith.constant 0 : index
    %c0_4 = arith.constant 0 : index
    %2 = vector.load %arg3[%c0_3, %c0_4] : memref<2x1024xf32, #tpu.memory_space<vmem>>, vector<2x1024xf32>
    %3 = arith.subf %0, %1 : vector<2x1024xf32>
    %4 = math.absf %3 : vector<2x1024xf32>
    %5 = arith.mulf %2, %4 : vector<2x1024xf32>
    %6 = vector.shape_cast %5 : vector<2x1024xf32> to vector<1x2x1024xf32>
    %cst = arith.constant dense<0.000000e+00> : vector<1xf32>
    %7 = vector.multi_reduction <add>, %6, %cst [1, 2] : vector<1x2x1024xf32> to vector<1xf32>
    %8 = vector.shape_cast %7 : vector<1xf32> to vector<1x1x1xf32>
    %9 = vector.extract %8[0, 0, 0] : f32 from vector<1x1x1xf32>
    %c0_5 = arith.constant 0 : index
    %c0_6 = arith.constant 0 : index
    %10 = memref.load %arg4[%c0_5, %c0_6] : memref<1x2xf32, #tpu.memory_space<smem>>
    memref.store %9, %arg4[%c0_5, %c0_6] : memref<1x2xf32, #tpu.memory_space<smem>>
    %11 = vector.shape_cast %2 : vector<2x1024xf32> to vector<1x2x1024xf32>
    %cst_7 = arith.constant dense<0.000000e+00> : vector<1xf32>
    %12 = vector.multi_reduction <add>, %11, %cst_7 [1, 2] : vector<1x2x1024xf32> to vector<1xf32>
    %13 = vector.shape_cast %12 : vector<1xf32> to vector<1x1x1xf32>
    %14 = vector.extract %13[0, 0, 0] : f32 from vector<1x1x1xf32>
    %c0_8 = arith.constant 0 : index
    %c1 = arith.constant 1 : index
    %15 = memref.load %arg4[%c0_8, %c1] : memref<1x2xf32, #tpu.memory_space<smem>>
    memref.store %14, %arg4[%c0_8, %c1] : memref<1x2xf32, #tpu.memory_space<smem>>
    return
  }
  func.func @transform_0(%arg0: i32) -> (i32, i32) {
    %c0_i32 = arith.constant 0 : i32
    %c0_i32_0 = arith.constant 0 : i32
    return %arg0, %c0_i32 : i32, i32
  }
  func.func @transform_1(%arg0: i32) -> (i32, i32) {
    %c0_i32 = arith.constant 0 : i32
    %c0_i32_0 = arith.constant 0 : i32
    return %arg0, %c0_i32 : i32, i32
  }
  func.func @transform_2(%arg0: i32) -> (i32, i32) {
    %c0_i32 = arith.constant 0 : i32
    %c0_i32_0 = arith.constant 0 : i32
    return %arg0, %c0_i32 : i32, i32
  }
  func.func @transform_3(%arg0: i32) -> (i32, i32) {
    %c0_i32 = arith.constant 0 : i32
    %c0_i32_0 = arith.constant 0 : i32
    return %arg0, %c0_i32 : i32, i32
  }
}

</mosaic_0001>

<bundles_post_ra>
// kernel: l1_loss.1
= control target key start
LH: loop header
LB: loop body
LE: loop exit
PB: predicated region body
PF: predicated region fallthrough
CT: control target
= control target key end

     0   :  { %v33_v3 = vlaneseq  ;;  %v205_v6 = vmov 1983009808   ;;  %s264_s0 = inlined_call_operand.vmem [shape: f32[2,1024], index: 0, kind: input, shape index: {}]   ;;  %s265_s1 = inlined_call_operand.vmem [shape: f32[2,1024], index: 1, kind: input, shape index: {}]   ;;  %s266_s2 = inlined_call_operand.vmem [shape: f32[2,1024], index: 2, kind: input, shape index: {}]   ;;  %s267_s3 = inlined_call_operand.vmem [shape: f32[1,2], index: 3, kind: output, shape index: {}]  }
   0x1   :  { %v15_v0 = vld [vmem:[%s264_s0] sm:$0xff]  ;;  %v16_v1 = vld [vmem:[%s264_s0 + $0x8] sm:$0xff]  ;;  %v31_v7 = vunpack.c.l.s4 %v205_v6 }
   0x2   :  { %v17_v2 = vld [vmem:[%s265_s1] sm:$0xff]  ;;  %v18_v4 = vld [vmem:[%s265_s1 + $0x8] sm:$0xff]  ;;  %v34_v10 = vshrl.u32 %v33_v3, 7 }
   0x3   :  { %v21_v5 = vsub.f32 %v15_v0, %v17_v2  ;;  %v19_v8 = vld [vmem:[%s266_s2] sm:$0xff]  ;;  %v22_v9 = vsub.f32 %v16_v1, %v18_v4 }
   0x4   :  { %8 = vsyncpa [#allocation3], 0  ;;  %v20_v11 = vld [vmem:[%s266_s2 + $0x8] sm:$0xff]  ;;  %v32_v13 = vunpack.c.0.s8 %v31_v7  ;;  %v100_v14 = vcombine.high %v19_v8, %v19_v8  ;;  %vm71_vm0 = vcmask 1041408   ;;  %s174_s24 = sshll.u32 %s267_s3, 4  ;;  %s175_s24 = int_to_ptr.vmem [resolvable:$true] %s174_s24 }
   0x5   :  { %v23_v12 = vand.u32 2147483647, %v21_v5  ;;  %v24_v15 = vand.u32 2147483647, %v22_v9  ;;  %v117_v29 = vcombine.high %v20_v11, %v20_v11  ;;  %s191_s26 = scalar_lea.vmem %s175_s24, 16  ;;  %p196_p1 = scmp.lt.s32.totalorder %s175_s24, %s175_s24 }
   0x6   :  { %v35_v17 = vsub.s32 %v32_v13, %v34_v10  ;;  %p192_p0 = scmp.ne.s32.totalorder %s175_s24, %s191_s26  ;;  %p197_p2 = scmp.lt.s32.totalorder %s191_s26, %s191_s26 }
   0x7   :  { %v25_v16 = vmul.f32 %v23_v12, %v19_v8  ;;  %v26_v18 = vmul.f32 %v24_v15, %v20_v11 }
   0x8   :  { %v107_v21 = vrot.slane %v19_v8, %v35_v17  ;;  %v114_v22 = vrot.slane %v100_v14, %v35_v17  ;;  %v124_v30 = vrot.slane %v20_v11, %v35_v17  ;;  %v131_v45 = vrot.slane %v117_v29, %v35_v17  ;;  %p198_p3 = por %p197_p2, %p196_p1 }
   0x9   :  { %v29_v19 = vcombine.high %v25_v16, %v25_v16  ;;  %v36_v20 = vrot.slane %v25_v16, %v35_v17  ;;  %v46_v23 = vcombine.high %v26_v18, %v26_v18  ;;  %v53_v24 = vrot.slane %v26_v18, %v35_v17 }
   0xa   :  { %v115_v28 = vcombine.high %v107_v21, %v107_v21  ;;  %v116_v34 = vcombine.high %v114_v22, %v114_v22  ;;  %v142_v39 = vsel %vm71_vm0, %v107_v21, 0.0  ;;  %v145_v43 = vsel %vm71_vm0, %v114_v22, 0.0  ;;  %p199_p4 = pnand %p198_p3, %p192_p0 }
   0xb   :  { %v43_v25 = vrot.slane %v29_v19, %v35_v17  ;;  %v44_v26 = vcombine.high %v36_v20, %v36_v20  ;;  %v72_v27 = vsel %vm71_vm0, %v36_v20, 0.0  ;;  %v60_v35 = vrot.slane %v46_v23, %v35_v17 }
   0xc   :  { %v61_v37 = vcombine.high %v53_v24, %v53_v24  ;;  %v143_v40 = vsel %vm71_vm0, %v115_v28, 0.0  ;;  %v79_v44 = vsel %vm71_vm0, %v53_v24, 0.0  ;;  %v132_v46 = vcombine.high %v124_v30, %v124_v30 }
   0xd   :  { %v45_v31 = vcombine.high %v43_v25, %v43_v25  ;;  %v73_v32 = vsel %vm71_vm0, %v44_v26, 0.0  ;;  %v75_v33 = vsel %vm71_vm0, %v43_v25, 0.0  ;;  %v144_v42 = vadd.f32 %v143_v40, %v142_v39 }
   0xe   :  { %v74_v36 = vadd.f32 %v73_v32, %v72_v27  ;;  %v147_v47 = vsel %vm71_vm0, %v116_v34, 0.0  ;;  %v62_v50 = vcombine.high %v60_v35, %v60_v35  ;;  %v81_v51 = vsel %vm71_vm0, %v61_v37, 0.0 }
   0xf   :  { %v77_v38 = vsel %vm71_vm0, %v45_v31, 0.0  ;;  %v146_v49 = vadd.f32 %v145_v43, %v144_v42  ;;  %v149_v52 = vsel %vm71_vm0, %v124_v30, 0.0  ;;  %v83_v55 = vsel %vm71_vm0, %v60_v35, 0.0 }
  0x10   :  { %v76_v41 = vadd.f32 %v75_v33, %v74_v36  ;;  %v133_v56 = vcombine.high %v131_v45, %v131_v45  ;;  %v151_v57 = vsel %vm71_vm0, %v132_v46, 0.0  ;;  %v85_v60 = vsel %vm71_vm0, %v62_v50, 0.0 }
  0x11   :  { %v148_v54 = vadd.f32 %v147_v47, %v146_v49  ;;  %v153_v61 = vsel %vm71_vm0, %v131_v45, 0.0 }
  0x12   :  { %v78_v48 = vadd.f32 %v77_v38, %v76_v41  ;;  %v155_v0 = vsel %vm71_vm0, %v133_v56, 0.0 }
  0x13   :  { %v150_v59 = vadd.f32 %v149_v52, %v148_v54 }
  0x14   :  { %v80_v53 = vadd.f32 %v79_v44, %v78_v48 }
  0x15   :  { %v152_v63 = vadd.f32 %v151_v57, %v150_v59 }
  0x16   :  { %v82_v58 = vadd.f32 %v81_v51, %v80_v53 }
  0x17   :  { %v154_v2 = vadd.f32 %v153_v61, %v152_v63 }
  0x18   :  { %v84_v62 = vadd.f32 %v83_v55, %v82_v58 }
  0x19   :  { %v156_v3 = vadd.f32 %v155_v0, %v154_v2 }
  0x1a   :  { %v86_v1 = vadd.f32 %v85_v60, %v84_v62 }
  0x1c   :  { %87 = vadd.xlane.f32.xlu0 %v86_v1 }
  0x20   :  { %157 = vadd.xlane.f32.xlu0 %v156_v3 }
  0xa5   :  { %v88_v4 = vpop.xlane.xlu0 %87 }
  0xa6   :  { %v89_v5 = vrot.slane %v88_v4, 4 }
  0xa8   :  { %v90_v6 = vadd.f32 %v89_v5, %v88_v4 }
  0xa9   :  { %v158_v7 = vpop.xlane.xlu0 %157 }
  0xaa   :  { %v91_v8 = vrot.slane %v90_v6, 2  ;;  %v159_v9 = vrot.slane %v158_v7, 4 }
  0xac   :  { %v160_v10 = vadd.f32 %v159_v9, %v158_v7  ;;  %v92_v11 = vadd.f32 %v91_v8, %v90_v6 }
  0xae   :  { %v161_v12 = vrot.slane %v160_v10, 2  ;;  %v93_v13 = vrot.slane %v92_v11, 1 }
  0xb0   :  { %v162_v14 = vadd.f32 %v161_v12, %v160_v10  ;;  %v94_v15 = vadd.f32 %v93_v13, %v92_v11 }
  0xb2   :  { %183 = vpush %v94_v15  ;;  %v163_v16 = vrot.slane %v162_v14, 1 }
  0xb4   :  { %v164_v17 = vadd.f32 %v163_v16, %v162_v14 }
  0xb6   :  { %185 = vpush %v164_v17 }
  0xe3   :  { %s184_s1 = spop %183 }
  0xe4   :  { %97 = sst [smem:[#allocation2]] %s184_s1 }
  0xe7   :  { %s186_s25 = spop %185 }
  0xe8   :  { %167 = sst [smem:[#allocation2 + $0x1]] %s186_s25 }
  0xe9   :  { %202 = shalt.err (!%p199_p4)
}
  0xea   :  { %s206_s27 = smov [#allocation2]  }
  0xeb   :  { %177 = dma.smem_to_vmem %s206_s27, 16, %s175_s24, [#allocation3]  }
  0xec   :  { %203 = dma.done.wait [#allocation3], 16  }
  0xed   :  { %204 = vsyncadd [#allocation3], 4294967280 }
  0xee   :  { %181 = sfence }
  0xef   :  { %182 = vsyncpa [#allocation3], 1 }

</bundles_post_ra>
